<compile_context>
chip_gen: v6e
topology: v6e:2x2x1
jax: 0.10.0
libtpu: 0.0.40
codegen_flags: <defaults>
</compile_context>

<pallas_src>
import jax
import jax.numpy as jnp
from jax.experimental import pallas as pl
from jax.experimental.pallas import tpu as pltpu


def _outconv_kernel(x_ref, w_ref, b_ref, o_ref):
    """x_ref: (Cin, TM), w_ref: (Cout, Cin), b_ref: (Cout, 1), o_ref: (Cout, TM)."""
    cin, tm = x_ref.shape
    cout = o_ref.shape[0]

    x = x_ref[...]                                     # (Cin, TM)  lane-dense
    w = w_ref[...]                                     # (Cout, Cin)

    # Initialize the accumulator with the broadcast bias (hoisted, single init).
    acc = jnp.broadcast_to(b_ref[...], (cout, tm)).astype(jnp.float32)

    if cin <= 16:
        # Tiny channel count: VPU broadcast-FMAs, no MXU push/drain latency.
        for c in range(cin):
            acc = acc + w[:, c:c + 1] * x[c:c + 1, :]  # (Cout,1)*(1,TM) -> (Cout,TM)
    else:
        # Wide channels: one MXU matmul per tile, f32 accumulation.
        acc = acc + jnp.dot(w, x, preferred_element_type=jnp.float32)

    o_ref[...] = acc.astype(o_ref.dtype)


def out_conv(x_nchw, w_oc, b_o, *, tile_m=256):
    """1x1 convolution matching PyTorch Conv2d(in_channels, classes, kernel_size=1).

    x_nchw: (N, Cin, H, W)
    w_oc:   (Cout, Cin)   -- PyTorch weight (Cout, Cin, 1, 1) with the 1x1 dims squeezed
    b_o:    (Cout,)
    returns (N, Cout, H, W)
    """
    N, Cin, H, W = x_nchw.shape
    Cout = w_oc.shape[0]
    M = N * H * W

    # Channels-first flatten: batch+spatial land on the fast lane axis.
    x_flat = jnp.transpose(x_nchw, (1, 0, 2, 3)).reshape(Cin, M).astype(jnp.float32)

    # Lane-dense tiling of M (tile must be a multiple of the 128-lane width).
    tile_m = max(128, (tile_m // 128) * 128)
    n_tiles = pl.cdiv(M, tile_m)
    M_pad = n_tiles * tile_m
    if M_pad != M:
        x_flat = jnp.pad(x_flat, ((0, 0), (0, M_pad - M)))

    w = w_oc.astype(jnp.float32)                       # (Cout, Cin)
    b = b_o.reshape(Cout, 1).astype(jnp.float32)       # (Cout, 1)

    flops = 2 * M * Cin * Cout
    bytes_accessed = 4 * (Cin * M_pad + Cout * Cin + Cout + Cout * M_pad)

    out_flat = pl.pallas_call(
        _outconv_kernel,
        out_shape=jax.ShapeDtypeStruct((Cout, M_pad), jnp.float32),
        grid_spec=pltpu.PrefetchScalarGridSpec(
            num_scalar_prefetch=0,
            grid=(n_tiles,),
            in_specs=[
                pl.BlockSpec((Cin, tile_m), lambda m: (0, m)),   # pixels tile
                pl.BlockSpec((Cout, Cin), lambda m: (0, 0)),     # weights (resident)
                pl.BlockSpec((Cout, 1), lambda m: (0, 0)),       # bias    (resident)
            ],
            out_specs=pl.BlockSpec((Cout, tile_m), lambda m: (0, m)),
        ),
        compiler_params=pltpu.CompilerParams(
            dimension_semantics=("parallel",)),
        cost_estimate=pl.CostEstimate(
            flops=flops, transcendentals=0, bytes_accessed=bytes_accessed),
    )(x_flat, w, b)

    out = out_flat[:, :M].reshape(Cout, N, H, W)
    return jnp.transpose(out, (1, 0, 2, 3))            # back to NCHW


def reference_forward(x_nchw, w_oc, b_o):
    """Plain-JAX reference for Conv2d(in, classes, kernel_size=1)."""
    y = jnp.einsum('nchw,oc->nohw', x_nchw, w_oc)
    return y + b_o.reshape(1, -1, 1, 1)


if __name__ == "__main__":
    # Small shapes consistent with the module: batch=2, in_channels=4,
    # classes=3, spatial 16x16.
    N, Cin, Cout, H, W = 2, 4, 3, 16, 16

    key = jax.random.PRNGKey(0)
    kx, kw, kb = jax.random.split(key, 3)

    x = jax.random.normal(kx, (N, Cin, H, W), dtype=jnp.float32)
    w = jax.random.normal(kw, (Cout, Cin), dtype=jnp.float32) * 0.1
    b = jax.random.normal(kb, (Cout,), dtype=jnp.float32) * 0.1

    out = jax.block_until_ready(out_conv(x, w, b))
    ref = jax.block_until_ready(reference_forward(x, w, b))

    assert out.shape == (N, Cout, H, W), out.shape
    assert jnp.allclose(out, ref, atol=1e-5, rtol=1e-5), "mismatch vs reference"

    print("KERNEL_OK")
</pallas_src>

<mosaic_0001>
module attributes {stable_mosaic.version = 11 : i64} {
  func.func @_outconv_kernel(%arg0: i32, %arg1: memref<4x256xf32, #tpu.memory_space<vmem>>, %arg2: memref<3x4xf32, #tpu.memory_space<vmem>>, %arg3: memref<3x1xf32, #tpu.memory_space<vmem>>, %arg4: memref<3x256xf32, #tpu.memory_space<vmem>>) attributes {dimension_semantics = [#tpu.dimension_semantics<parallel>], iteration_bounds = array<i64: 2>, scalar_prefetch = 0 : i64, scratch_operands = 0 : i64, tpu.core_type = #tpu.core_type<tc>, window_params = [{transform_indices = @transform_0, window_bounds = array<i64: 4, 256>}, {pipeline_mode = #tpu.pipeline_mode<synchronous>, transform_indices = @transform_1, window_bounds = array<i64: 3, 4>}, {pipeline_mode = #tpu.pipeline_mode<synchronous>, transform_indices = @transform_2, window_bounds = array<i64: 3, 1>}, {transform_indices = @transform_3, window_bounds = array<i64: 3, 256>}]} {
    %c0 = arith.constant 0 : index
    %c0_0 = arith.constant 0 : index
    %0 = vector.load %arg1[%c0, %c0_0] : memref<4x256xf32, #tpu.memory_space<vmem>>, vector<4x256xf32>
    %c0_1 = arith.constant 0 : index
    %c0_2 = arith.constant 0 : index
    %1 = vector.load %arg2[%c0_1, %c0_2] : memref<3x4xf32, #tpu.memory_space<vmem>>, vector<3x4xf32>
    %c0_3 = arith.constant 0 : index
    %c0_4 = arith.constant 0 : index
    %2 = vector.load %arg3[%c0_3, %c0_4] : memref<3x1xf32, #tpu.memory_space<vmem>>, vector<3x1xf32>
    %3 = vector.shape_cast %2 : vector<3x1xf32> to vector<3x1xf32>
    %4 = vector.broadcast %3 : vector<3x1xf32> to vector<3x256xf32>
    %5 = vector.extract_strided_slice %1 {offsets = [0, 0], sizes = [3, 1], strides = [1, 1]} : vector<3x4xf32> to vector<3x1xf32>
    %6 = vector.extract_strided_slice %0 {offsets = [0, 0], sizes = [1, 256], strides = [1, 1]} : vector<4x256xf32> to vector<1x256xf32>
    %7 = vector.broadcast %5 : vector<3x1xf32> to vector<3x256xf32>
    %8 = vector.broadcast %6 : vector<1x256xf32> to vector<3x256xf32>
    %9 = arith.mulf %7, %8 : vector<3x256xf32>
    %10 = arith.addf %4, %9 : vector<3x256xf32>
    %11 = vector.extract_strided_slice %1 {offsets = [0, 1], sizes = [3, 1], strides = [1, 1]} : vector<3x4xf32> to vector<3x1xf32>
    %12 = vector.extract_strided_slice %0 {offsets = [1, 0], sizes = [1, 256], strides = [1, 1]} : vector<4x256xf32> to vector<1x256xf32>
    %13 = vector.broadcast %11 : vector<3x1xf32> to vector<3x256xf32>
    %14 = vector.broadcast %12 : vector<1x256xf32> to vector<3x256xf32>
    %15 = arith.mulf %13, %14 : vector<3x256xf32>
    %16 = arith.addf %10, %15 : vector<3x256xf32>
    %17 = vector.extract_strided_slice %1 {offsets = [0, 2], sizes = [3, 1], strides = [1, 1]} : vector<3x4xf32> to vector<3x1xf32>
    %18 = vector.extract_strided_slice %0 {offsets = [2, 0], sizes = [1, 256], strides = [1, 1]} : vector<4x256xf32> to vector<1x256xf32>
    %19 = vector.broadcast %17 : vector<3x1xf32> to vector<3x256xf32>
    %20 = vector.broadcast %18 : vector<1x256xf32> to vector<3x256xf32>
    %21 = arith.mulf %19, %20 : vector<3x256xf32>
    %22 = arith.addf %16, %21 : vector<3x256xf32>
    %23 = vector.extract_strided_slice %1 {offsets = [0, 3], sizes = [3, 1], strides = [1, 1]} : vector<3x4xf32> to vector<3x1xf32>
    %24 = vector.extract_strided_slice %0 {offsets = [3, 0], sizes = [1, 256], strides = [1, 1]} : vector<4x256xf32> to vector<1x256xf32>
    %25 = vector.broadcast %23 : vector<3x1xf32> to vector<3x256xf32>
    %26 = vector.broadcast %24 : vector<1x256xf32> to vector<3x256xf32>
    %27 = arith.mulf %25, %26 : vector<3x256xf32>
    %28 = arith.addf %22, %27 : vector<3x256xf32>
    %c0_5 = arith.constant 0 : index
    %c0_6 = arith.constant 0 : index
    %29 = vector.load %arg4[%c0_5, %c0_6] : memref<3x256xf32, #tpu.memory_space<vmem>>, vector<3x256xf32>
    tpu.vector_store %arg4[%c0_5, %c0_6], %28 {strides = array<i32>} : memref<3x256xf32, #tpu.memory_space<vmem>>, vector<3x256xf32>,
    return
  }
  func.func @transform_0(%arg0: i32) -> (i32, i32) {
    %c0_i32 = arith.constant 0 : i32
    %c0_i32_0 = arith.constant 0 : i32
    return %c0_i32, %arg0 : i32, i32
  }
  func.func @transform_1(%arg0: i32) -> (i32, i32) {
    %c0_i32 = arith.constant 0 : i32
    %c0_i32_0 = arith.constant 0 : i32
    %c0_i32_1 = arith.constant 0 : i32
    return %c0_i32, %c0_i32_0 : i32, i32
  }
  func.func @transform_2(%arg0: i32) -> (i32, i32) {
    %c0_i32 = arith.constant 0 : i32
    %c0_i32_0 = arith.constant 0 : i32
    %c0_i32_1 = arith.constant 0 : i32
    return %c0_i32, %c0_i32_0 : i32, i32
  }
  func.func @transform_3(%arg0: i32) -> (i32, i32) {
    %c0_i32 = arith.constant 0 : i32
    %c0_i32_0 = arith.constant 0 : i32
    return %c0_i32, %arg0 : i32, i32
  }
}

</mosaic_0001>

<bundles_post_ra>
// kernel: tpu_custom_call.1
= control target key start
LH: loop header
LB: loop body
LE: loop exit
PB: predicated region body
PF: predicated region fallthrough
CT: control target
= control target key end

     0   :  { %8 = vsyncpa [#allocation3], 0  ;;  %s734_s0 = inlined_call_operand.hbm [shape: f32[4,512], index: 0, kind: input, shape index: {}]   ;;  %s735_s1 = inlined_call_operand.vmem [shape: f32[3,4], index: 1, kind: input, shape index: {}]   ;;  %s736_s2 = inlined_call_operand.vmem [shape: f32[3,1], index: 2, kind: input, shape index: {}]   ;;  %s737_s3 = inlined_call_operand.hbm [shape: f32[3,512], index: 3, kind: output, shape index: {}]  }
   0x1   :  { %10 = vsyncpa [#allocation3 + $0x1], 0 }
   0x2   :  { %11 = vsyncpa [#allocation4], 0 }
   0x3   :  { %13 = vsyncpa [#allocation4 + $0x1], 0  ;;  %s583_s12 = smov 0   ;;  %s585_s13 = smov 0  }
   0x4   :  { %s587_s14 = smov 0   ;;  %s589_s15 = smov 0  }
   0x5 LB: > { %s604_s16 = sadd.s32 4294967295, %s555_s15   ;;  %s393_s17 = sadd.s32 4294967294, %s555_s15   ;;  %s555_s15 = sphi %s589_s15, %s754_s15   ;;  %s551_s14 = sphi %s587_s14, %s753_s14   ;;  %s547_s13 = sphi %s585_s13, %s752_s13   ;;  %s543_s12 = sphi %s583_s12, %s751_s12  }
   0x6   : > { %s608_s18 = sadd.s32 1, %s555_s15   ;;  %s26_s19 = sadd.s32 1, %s551_s14 }
   0x7   : > { %s23_s20 = ssub.s32 %s555_s15, %s608_s18  ;;  %p33_p0 = scmp.ne.s32.totalorder %s551_s14, %s547_s13 }
   0x8   : > { %p24_p1 = scmp.eq.s32.totalorder %s23_s20, 0  ;;  %p34_p2 = scmp.eq.s32.totalorder %s555_s15, 0 }
   0x9   : > { %p39_p3 = scmp.ne.s32.totalorder %s547_s13, %s543_s12  ;;  %p40_p4 = scmp.eq.s32.totalorder %s604_s16, 0 }
   0xa   : > { %s620_s21 = scalar_select %p24_p1, %s551_s14, %s26_s19  }
   0xb   : > { %p622_p5 = por %p34_p2, %p33_p0  ;;  %p626_p6 = por %p40_p4, %p39_p3 }
   0xc   : > { %p105_p7 = scmp.eq.s32.totalorder %s604_s16, 1  ;;  %p111_p8 = scmp.eq.s32.totalorder %s393_s17, 1 }
   0xd   : > { %s741_s23 = scalar_select %p626_p6, 1, 0 }
   0xe   : > { %p421_p10 = scmp.lt.s32.totalorder %s555_s15, 2  ;;  %p633_p11 = por %p105_p7, %p33_p0 }
   0xf   : > { %p637_p12 = por %p111_p8, %p39_p3  ;;  %s137_s26 = sand.u32 1, %s551_s14  }
  0x10   : > { %s742_s24 = scalar_select %p633_p11, 1, 0 }
  0x11   : > { %s743_s25 = scalar_select %p637_p12, 1, 0 }
  0x12   : > { %s407_s27 = sshll.u32 %s555_s15, 7  ;;  %s396_s28 = sshll.u32 %s137_s26, 3 }
  0x13   : > { %s646_s4 = scalar_lea.hbm %s734_s0, %s407_s27  ;;  %s141_s5 = scalar_lea.vmem [#allocation2], %s396_s28 }
  0x14   : > { %s149_s6 = sshll.u32 %s141_s5, 4  ;;  %p650_p13 = pnand %p421_p10, %p622_p5  ;;  %s654_s6 = int_to_ptr.vmem [resolvable:$true] %s149_s6 }
  0x15   : > { %s138_s8 = scalar_lea.sflag [#allocation3], %s137_s26  ;;  %s463_s9 = scalar_lea.hbm %s646_s4, 128 }
  0x16   : > { %p464_p2 = scmp.ne.s32.totalorder %s646_s4, %s463_s9  ;;  %p465_p3 = pneg %p650_p13 }
  0x17   : > { %s468_s17 = scalar_lea.hbm %s734_s0, 256  ;;  %p469_p5 = scmp.lt.s32.totalorder %s646_s4, %s734_s0 }
  0x18   : > { %p466_p4 = pnand %p465_p3, %p464_p2  ;;  %p470_p8 = scmp.lt.s32.totalorder %s468_s17, %s463_s9 }
  0x1a   : > { %p467_p7 = pneg %p466_p4  ;;  %p471_p10 = por %p470_p8, %p469_p5 }
  0x1c   : > { %p472_p9 = pnand %p471_p10, %p467_p7 }
  0x1e   : > { %475 = shalt.err (!%p472_p9)
}
  0x1f   : > { %s476_s22 = scalar_lea.vmem %s654_s6, 128  ;;  %s557_s26 = smov [#allocation2]  }
  0x20   : > { %p477_p0 = scmp.ne.s32.totalorder %s654_s6, %s476_s22  ;;  %s481_s27 = sshll.u32 %s557_s26, 4  ;;  %s482_s27 = int_to_ptr.vmem [resolvable:$false] %s481_s27 }
  0x21   : > { %s483_s28 = scalar_lea.vmem %s482_s27, 256  ;;  %p484_p4 = scmp.lt.s32.totalorder %s654_s6, %s482_s27 }
  0x22   : > { %p479_p1 = pnand %p477_p0, %p465_p3  ;;  %p485_p12 = scmp.lt.s32.totalorder %s483_s28, %s476_s22 }
  0x24   : > { %p480_p2 = pneg %p479_p1  ;;  %p486_p11 = por %p485_p12, %p484_p4 }
  0x26   : > { %p487_p6 = pnand %p486_p11, %p480_p2 }
  0x28   : > { %490 = shalt.err (!%p487_p6)
}
  0x29   : > { %416 = dma.hbm_to_vmem [thread:$0]  (!%p650_p13), %s646_s4, 128, %s654_s6, %s138_s8  }
  0x2a   : > { %p745_p9 = scmp.lt.s32.totalorder %s555_s15, 3  ;;  %p746_p7 = scmp.ge.s32.totalorder %s555_s15, 1 }
  0x2c   : > { %p155_p0 = pnand %p746_p7, %p745_p9 }
  0x2d   : > { %s681_s29 = sand.u32 (!%p155_p0), 1, %s547_s13   ;;  %p747_p6 = scmp.ne.s32.totalorder (!%p155_p0), %s741_s23, 0 }
  0x2e   : > { %158 = sbr.rel (%p155_p0) target bundleno = 206 (0xce), region = 32  ;;  %s400_s30 = sshll.u32 (!%p155_p0), %s681_s29, 3 }
  0x2f   : > { %s161_s5 = scalar_lea.sflag (!%p155_p0), [#allocation3], %s681_s29  ;;  %s164_s7 = scalar_lea.vmem (!%p155_p0), [#allocation2], %s400_s30 }
  0x33   : > { %534 = dma.done.wait (%p747_p6), %s161_s5, 128  }
  0x34   : > { %536 = vsyncadd (%p747_p6), %s161_s5, 4294967168  ;;  %v558_v0 = vmov 0   ;;  %v559_v1 = vmov 1   ;;  %v190_v2 = vld [vmem:[%s735_s1] sm:$0x7]  ;;  %v560_v4 = vmov 2   ;;  %v203_v6 = vlaneseq }
  0x35   : > { %459 = vset.pattern.permute.xlu0 %v558_v0  ;;  %460 = vset.pattern.permute.xlu1 %v559_v1  ;;  %v191_v3 = vld [vmem:[%s736_s2] sm:$0x7]  ;;  %v561_v5 = vmov 3   ;;  %s408_s23 = sshll.u32 %s604_s16, 7  ;;  %s186_s10 = scalar_lea.vmem [#allocation5], %s400_s30 }
  0x36   : > { %199 = vperm.xlu0 %459, %v190_v2   ;;  %226 = vperm.xlu1 %460, %v190_v2   ;;  %v204_v7 = vshrl.u32 %v203_v6, 7  ;;  %v189_v10 = vld [vmem:[%s164_s7] sm:$0xff]  ;;  %s323_s11 = sshll.u32 %s186_s10, 4  ;;  %s321_s20 = scalar_lea.hbm %s737_s3, %s408_s23  ;;  %s324_s11 = int_to_ptr.vmem [resolvable:$true] %s323_s11 }
  0x37   : > { %s309_s22 = scalar_lea.sflag [#allocation4], %s681_s29  ;;  %s491_s26 = scalar_lea.vmem %s324_s11, 128 }
  0x38   : > { %v205_v8 = vsub.s32 0, %v204_v7  ;;  %v209_v9 = vsub.s32 4, %v204_v7  ;;  %v231_v11 = vsub.s32 1, %v204_v7  ;;  %v235_v12 = vsub.s32 5, %v204_v7  ;;  %p492_p11 = scmp.ne.s32.totalorder %s324_s11, %s491_s26  ;;  %p748_p12 = scmp.ne.s32.totalorder %s742_s24, 0 }
  0x39   : > { %v257_v13 = vsub.s32 2, %v204_v7  ;;  %v261_v14 = vsub.s32 6, %v204_v7  ;;  %v283_v21 = vsub.s32 3, %v204_v7  ;;  %v287_v22 = vsub.s32 7, %v204_v7  ;;  %s562_s27 = smov [#allocation5]  }
  0x3a   : > { %194 = vperm.xlu0 %459, %v191_v3   ;;  %461 = vset.pattern.permute.xlu1 %v560_v4  ;;  %v206_v15 = vrot.slane %v189_v10, %v205_v8  ;;  %v210_v16 = vrot.slane %v189_v10, %v209_v9  ;;  %v232_v17 = vrot.slane %v189_v10, %v231_v11  ;;  %p493_p13 = pnand %p492_p11, %p748_p12  ;;  %s495_s16 = sshll.u32 %s562_s27, 4  ;;  %s496_s16 = int_to_ptr.vmem [resolvable:$false] %s495_s16 }
  0x3b   : > { %252 = vperm.xlu1 %461, %v190_v2   ;;  %v236_v18 = vrot.slane %v189_v10, %v235_v12  ;;  %v258_v19 = vrot.slane %v189_v10, %v257_v13  ;;  %v262_v20 = vrot.slane %v189_v10, %v261_v14  ;;  %v284_v31 = vrot.slane %v189_v10, %v283_v21  ;;  %s497_s28 = scalar_lea.vmem %s496_s16, 256  ;;  %p498_p3 = scmp.lt.s32.totalorder %s324_s11, %s496_s16 }
  0x3c   : > { %v216_v23 = vrot.slane %v206_v15, %v205_v8  ;;  %v220_v24 = vrot.slane %v210_v16, %v205_v8  ;;  %v242_v27 = vrot.slane %v232_v17, %v231_v11  ;;  %v288_v32 = vrot.slane %v189_v10, %v287_v22  ;;  %p494_p1 = pneg %p493_p13  ;;  %p499_p5 = scmp.lt.s32.totalorder %s497_s28, %s491_s26 }
  0x3d   : > { %v246_v28 = vrot.slane %v236_v18, %v231_v11  ;;  %v268_v29 = vrot.slane %v258_v19, %v257_v13  ;;  %v272_v30 = vrot.slane %v262_v20, %v257_v13  ;;  %v294_v43 = vrot.slane %v284_v31, %v283_v21 }
  0x3e   : > { %462 = vset.pattern.permute.xlu0 %v561_v5  ;;  %v298_v44 = vrot.slane %v288_v32, %v283_v21  ;;  %p500_p8 = por %p499_p5, %p498_p3 }
  0x3f   : > { %278 = vperm.xlu0 %462, %v190_v2  }
  0x40   : > { %p501_p10 = pnand %p500_p8, %p494_p1 }
  0xb1   : > { %v200_v25 = vpop.permute.xlu0 %199  ;;  %v227_v26 = vpop.permute.xlu1 %226 }
  0xb2   : > { %v221_v33 = vmul.f32 %v216_v23, %v200_v25  ;;  %v222_v34 = vmul.f32 %v220_v24, %v200_v25  ;;  %v247_v36 = vmul.f32 %v242_v27, %v227_v26  ;;  %v248_v37 = vmul.f32 %v246_v28, %v227_v26 }
  0xb5   : > { %v195_v35 = vpop.permute.xlu0 %194 }
  0xb6   : > { %v223_v38 = vadd.f32 %v221_v33, %v195_v35  ;;  %v224_v39 = vadd.f32 %v222_v34, %v195_v35  ;;  %v253_v40 = vpop.permute.xlu1 %252 }
  0xb7   : > { %v273_v41 = vmul.f32 %v268_v29, %v253_v40  ;;  %v274_v42 = vmul.f32 %v272_v30, %v253_v40 }
  0xb8   : > { %v249_v45 = vadd.f32 %v247_v36, %v223_v38  ;;  %v250_v46 = vadd.f32 %v248_v37, %v224_v39 }
  0xba   : > { %v275_v47 = vadd.f32 %v273_v41, %v249_v45  ;;  %v276_v48 = vadd.f32 %v274_v42, %v250_v46  ;;  %v279_v49 = vpop.permute.xlu0 %278 }
  0xbb   : > { %v299_v50 = vmul.f32 %v294_v43, %v279_v49  ;;  %v300_v51 = vmul.f32 %v298_v44, %v279_v49 }
  0xbd   : > { %v301_v52 = vadd.f32 %v299_v50, %v275_v47  ;;  %v302_v53 = vadd.f32 %v300_v51, %v276_v48 }
  0xbf   : > { %v305_v54 = vcombine.low %v301_v52, %v302_v53 }
  0xc1   : > { %307 = vst [vmem:[%s186_s10] sm:$0x77] %v305_v54 }
  0xc2   : > { %504 = shalt.err (!%p501_p10)
}
  0xc3   : > { %s505_s30 = scalar_lea.hbm %s321_s20, 128  ;;  %s509_s7 = scalar_lea.hbm %s737_s3, 256 }
  0xc4   : > { %p506_p2 = scmp.ne.s32.totalorder %s321_s20, %s505_s30  ;;  %p510_p7 = scmp.lt.s32.totalorder %s321_s20, %s737_s3 }
  0xc5   : > { %p511_p0 = scmp.lt.s32.totalorder %s509_s7, %s505_s30 }
  0xc6   : > { %p507_p4 = pnand %p506_p2, %p748_p12 }
  0xc7   : > { %p512_p6 = por %p511_p0, %p510_p7 }
  0xc8   : > { %p508_p9 = pneg %p507_p4 }
  0xca   : > { %p513_p11 = pnand %p512_p6, %p508_p9 }
  0xcc   : > { %516 = shalt.err (!%p513_p11)
}
  0xcd   : > { %411 = dma.vmem_to_hbm [thread:$0]  (%p748_p12), %s324_s11, 128, %s321_s20, %s309_s22  }
  0xce PF: > { %s335_s8 = sand.u32 1, %s543_s12   ;;  %p749_p13 = scmp.ne.s32.totalorder %s743_s25, 0 }
  0xcf   : > { %p750_p1 = scmp.ge.s32.totalorder %s555_s15, 2  ;;  %s336_s9 = scalar_lea.sflag [#allocation4], %s335_s8 }
  0xd1   : > { %p418_p3 = pnand %p750_p1, %p749_p13 }
  0xd3   : > { %p419_p5 = pneg %p418_p3 }
  0xd5   : > { %538 = dma.done.wait (%p419_p5), %s336_s9, 128  }
  0xd6   : > { %540 = vsyncadd (%p419_p5), %s336_s9, 4294967168  ;;  %p16_p8 = scmp.ge.s32.totalorder %s608_s18, 4   ;;  %s751_s12 = smov %s547_s13 }
  0xd7   : > { %s752_s13 = smov %s551_s14  ;;  %s753_s14 = smov %s620_s21 }
  0xd8   : > { %s754_s15 = smov %s608_s18  ;;  %18 = sbr.rel (!%p16_p8) target bundleno = 5 (0x5), region = 77 }
  0xdd   :  { %341 = vsyncpa [#allocation3], 1 }
  0xde   :  { %343 = vsyncpa [#allocation3 + $0x1], 1 }
  0xdf   :  { %344 = vsyncpa [#allocation4], 1 }
  0xe0   :  { %346 = vsyncpa [#allocation4 + $0x1], 1 }

</bundles_post_ra>
